<compile_context>
chip_gen: v5e
topology: v5e:2x2
jax: 0.10.0
libtpu: 0.0.40
codegen_flags: <defaults>
</compile_context>

<pallas_src>
import functools

import jax
import jax.numpy as jnp
from jax.experimental import pallas as pl
from jax.experimental.pallas import tpu as pltpu

LANE = 128
DEFAULT_TILE_B = 2048  # fits comfortably in the 16 MiB v5e scoped-VMEM default


def _round_up(x, m):
    return ((x + m - 1) // m) * m


# ----------------------------------------------------------------------------- kernel
def _mlp_kernel(x_ref, w1_ref, b1_ref, w2_ref, b2_ref, o_ref, *, dim_out):
    # fc1 + ReLU  (bf16 MXU operands, f32 accumulation; cast of x done in-kernel)
    x = x_ref[...].astype(jnp.bfloat16)
    h = jnp.dot(x, w1_ref[...], preferred_element_type=jnp.float32)
    h = jnp.maximum(h + b1_ref[...], 0.0)                      # f32 bias / ReLU
    # fc2 (padded output lanes get logits == bias == -1e30 -> vanish in softmax)
    logits = jnp.dot(h.astype(jnp.bfloat16), w2_ref[...],
                     preferred_element_type=jnp.float32) + b2_ref[...]
    # log_softmax over the last axis (f32 throughout)
    m = jnp.max(logits, axis=-1, keepdims=True)
    s = logits - m
    lse = jnp.log(jnp.sum(jnp.exp(s), axis=-1, keepdims=True))
    # store only the valid dim_out lanes (narrow, HBM-cheap output)
    o_ref[...] = (s - lse)[:, :dim_out].astype(o_ref.dtype)


# ----------------------------------------------------------------------- param prep
def prepare_params(w1, b1, w2, b2):
    """One-time padding/casting of the parameters (hoisted out of the call path).

    w1: (dimIn, H); b1: (1, H); w2: (H, dimOut); b2: (1, dimOut), all f32,
    stored pre-transposed relative to torch.nn.Linear.
    """
    dim_in, hidden = w1.shape
    dim_out = w2.shape[1]
    h_pad = _round_up(hidden, LANE)
    o_pad = _round_up(dim_out, LANE)

    w1p = jnp.zeros((dim_in, h_pad), jnp.float32).at[:, :hidden].set(w1).astype(jnp.bfloat16)
    b1p = jnp.zeros((1, h_pad), jnp.float32).at[:, :hidden].set(b1)
    w2p = jnp.zeros((h_pad, o_pad), jnp.float32).at[:hidden, :dim_out].set(w2).astype(jnp.bfloat16)
    # padded w2 columns are zero, so poisoning the padded bias lanes makes the
    # padded logits -1e30 -> they contribute nothing to the softmax normalizer.
    b2p = jnp.full((1, o_pad), -1e30, jnp.float32).at[:, :dim_out].set(b2)
    return {"w1": w1p, "b1": b1p, "w2": w2p, "b2": b2p, "dim_out": dim_out}


# ------------------------------------------------------------------------- forward
def torchnet_forward(x, params, *, tile_b=DEFAULT_TILE_B):
    """x: (B, dimIn) f32; params: output of prepare_params().

    Returns (B, dimOut) f32 log-probabilities.
    """
    B, dim_in = x.shape
    w1p, b1p, w2p, b2p = params["w1"], params["b1"], params["w2"], params["b2"]
    dim_out = params["dim_out"]
    h_pad = w1p.shape[1]
    o_pad = w2p.shape[1]

    # Tile picker: rows multiple of 8; aim for >=2 grid steps (v7x has 2 TCs).
    tb = max(8, min(tile_b, _round_up(pl.cdiv(B, 2), 8)))

    if B < tb:  # only when B < 8: pad rows up to one full (8-row) block
        x_in = jnp.zeros((tb, dim_in), x.dtype).at[:B].set(x)
        rows = tb
    else:       # no copy: ragged last block is masked on writeback by Pallas
        x_in = x
        rows = B

    grid = (pl.cdiv(rows, tb),)
    out = pl.pallas_call(
        functools.partial(_mlp_kernel, dim_out=dim_out),
        out_shape=jax.ShapeDtypeStruct((rows, dim_out), jnp.float32),
        grid=grid,
        in_specs=[
            pl.BlockSpec((tb, dim_in), lambda i: (i, 0)),      # x: tiled over batch
            pl.BlockSpec((dim_in, h_pad), lambda i: (0, 0)),   # w1: VMEM-resident
            pl.BlockSpec((1, h_pad), lambda i: (0, 0)),        # b1
            pl.BlockSpec((h_pad, o_pad), lambda i: (0, 0)),    # w2
            pl.BlockSpec((1, o_pad), lambda i: (0, 0)),        # b2 (poisoned pad lanes)
        ],
        out_specs=pl.BlockSpec((tb, dim_out), lambda i: (i, 0)),  # narrow output
        compiler_params=pltpu.CompilerParams(
            dimension_semantics=("parallel",)),                # shard batch on v7x
    )(x_in, w1p, b1p, w2p, b2p)

    return out[:B] if rows != B else out


# ---------------------------------------------------------------------------- init
def init_params(key, dim_in, dim_out, hidden=100):
    """Deterministic init mirroring torch.nn.Linear: U(-1/sqrt(fan_in), 1/sqrt(fan_in))."""
    k1, k2, k3, k4 = jax.random.split(key, 4)
    bound1 = 1.0 / jnp.sqrt(dim_in)
    bound2 = 1.0 / jnp.sqrt(hidden)
    w1 = jax.random.uniform(k1, (dim_in, hidden), jnp.float32, -bound1, bound1)
    b1 = jax.random.uniform(k2, (1, hidden), jnp.float32, -bound1, bound1)
    w2 = jax.random.uniform(k3, (hidden, dim_out), jnp.float32, -bound2, bound2)
    b2 = jax.random.uniform(k4, (1, dim_out), jnp.float32, -bound2, bound2)
    return w1, b1, w2, b2


# ----------------------------------------------------------------------- references
def _reference_bf16(x, w1, b1, w2, b2):
    """Pure-JAX reference mirroring the kernel's bf16-operand / f32-accumulate path."""
    f32 = jnp.float32
    xb = x.astype(jnp.bfloat16).astype(f32)
    w1b = w1.astype(jnp.bfloat16).astype(f32)
    w2b = w2.astype(jnp.bfloat16).astype(f32)
    h = jnp.maximum(xb @ w1b + b1, 0.0)
    hb = h.astype(jnp.bfloat16).astype(f32)
    logits = hb @ w2b + b2
    return jax.nn.log_softmax(logits, axis=1)


def _reference_f32(x, w1, b1, w2, b2):
    h = jnp.maximum(x @ w1 + b1, 0.0)
    return jax.nn.log_softmax(h @ w2 + b2, axis=1)


# TODO(synk): trainNet / SGD / NLLLoss are training-loop code, not part of the
# forward pass, and are intentionally not implemented as kernels.

if __name__ == "__main__":
    key = jax.random.PRNGKey(0)
    dim_in, dim_out = 32, 10

    k_x, k_p, k_x2 = jax.random.split(key, 3)
    w1, b1, w2, b2 = init_params(k_p, dim_in, dim_out)
    params = prepare_params(w1, b1, w2, b2)   # one-time padding/cast (hoisted)

    # small batch (single grid step)
    x = jax.random.normal(k_x, (8, dim_in), jnp.float32)
    out = jax.block_until_ready(torchnet_forward(x, params))
    assert out.shape == (8, dim_out)
    assert jnp.allclose(out, _reference_bf16(x, w1, b1, w2, b2), atol=5e-3), \
        "mismatch vs bf16-mirrored reference (small batch)"
    assert jnp.allclose(out, _reference_f32(x, w1, b1, w2, b2), atol=1e-1), \
        "mismatch vs f32 reference (small batch)"

    # larger batch: default tile picker (2 ragged steps) ...
    x2 = jax.random.normal(k_x2, (200, dim_in), jnp.float32)
    out2 = jax.block_until_ready(torchnet_forward(x2, params))
    assert out2.shape == (200, dim_out)
    assert jnp.allclose(out2, _reference_bf16(x2, w1, b1, w2, b2), atol=5e-3), \
        "mismatch vs bf16-mirrored reference (default tiling)"

    # ... and an explicit small tile exercising a 4-step grid with a ragged tail
    out3 = jax.block_until_ready(torchnet_forward(x2, params, tile_b=64))
    assert out3.shape == (200, dim_out)
    assert jnp.allclose(out3, _reference_bf16(x2, w1, b1, w2, b2), atol=5e-3), \
        "mismatch vs bf16-mirrored reference (tile_b=64)"

    print("KERNEL_OK")
</pallas_src>

<mosaic_0001>
module attributes {stable_mosaic.version = 11 : i64} {
  func.func @_mlp_kernel(%arg0: i32, %arg1: memref<8x32xf32, #tpu.memory_space<vmem>>, %arg2: memref<32x128xbf16, #tpu.memory_space<vmem>>, %arg3: memref<1x128xf32, #tpu.memory_space<vmem>>, %arg4: memref<128x128xbf16, #tpu.memory_space<vmem>>, %arg5: memref<1x128xf32, #tpu.memory_space<vmem>>, %arg6: memref<8x10xf32, #tpu.memory_space<vmem>>) attributes {dimension_semantics = [#tpu.dimension_semantics<parallel>], iteration_bounds = array<i64: 1>, scalar_prefetch = 0 : i64, scratch_operands = 0 : i64, tpu.core_type = #tpu.core_type<tc>, window_params = [{transform_indices = @transform_0, window_bounds = array<i64: 8, 32>}, {pipeline_mode = #tpu.pipeline_mode<synchronous>, transform_indices = @transform_1, window_bounds = array<i64: 32, 128>}, {pipeline_mode = #tpu.pipeline_mode<synchronous>, transform_indices = @transform_2, window_bounds = array<i64: 1, 128>}, {pipeline_mode = #tpu.pipeline_mode<synchronous>, transform_indices = @transform_3, window_bounds = array<i64: 128, 128>}, {pipeline_mode = #tpu.pipeline_mode<synchronous>, transform_indices = @transform_4, window_bounds = array<i64: 1, 128>}, {transform_indices = @transform_5, window_bounds = array<i64: 8, 10>}]} {
    %c0 = arith.constant 0 : index
    %c0_0 = arith.constant 0 : index
    %0 = vector.load %arg1[%c0, %c0_0] : memref<8x32xf32, #tpu.memory_space<vmem>>, vector<8x32xf32>
    %1 = arith.truncf %0 : vector<8x32xf32> to vector<8x32xbf16>
    %c0_1 = arith.constant 0 : index
    %c0_2 = arith.constant 0 : index
    %2 = vector.load %arg2[%c0_1, %c0_2] : memref<32x128xbf16, #tpu.memory_space<vmem>>, vector<32x128xbf16>
    %cst = arith.constant dense<0.000000e+00> : vector<8x128xf32>
    %3 = tpu.matmul %1, %2, %cst {dimension_numbers = #tpu.dot_dimension_numbers<[1], [0], [0], [1], [0, 0, 1, 1], [], []>} : vector<8x32xbf16>, vector<32x128xbf16>, vector<8x128xf32> -> vector<8x128xf32>
    %c0_3 = arith.constant 0 : index
    %c0_4 = arith.constant 0 : index
    %4 = vector.load %arg3[%c0_3, %c0_4] : memref<1x128xf32, #tpu.memory_space<vmem>>, vector<1x128xf32>
    %5 = vector.broadcast %4 : vector<1x128xf32> to vector<8x128xf32>
    %6 = arith.addf %3, %5 : vector<8x128xf32>
    %cst_5 = arith.constant 0.000000e+00 : f32
    %7 = vector.broadcast %cst_5 : f32 to vector<8x128xf32>
    %8 = arith.maximumf %6, %7 : vector<8x128xf32>
    %9 = arith.truncf %8 : vector<8x128xf32> to vector<8x128xbf16>
    %c0_6 = arith.constant 0 : index
    %c0_7 = arith.constant 0 : index
    %10 = vector.load %arg4[%c0_6, %c0_7] : memref<128x128xbf16, #tpu.memory_space<vmem>>, vector<128x128xbf16>
    %cst_8 = arith.constant dense<0.000000e+00> : vector<8x128xf32>
    %11 = tpu.matmul %9, %10, %cst_8 {dimension_numbers = #tpu.dot_dimension_numbers<[1], [0], [0], [1], [0, 0, 1, 1], [], []>} : vector<8x128xbf16>, vector<128x128xbf16>, vector<8x128xf32> -> vector<8x128xf32>
    %c0_9 = arith.constant 0 : index
    %c0_10 = arith.constant 0 : index
    %12 = vector.load %arg5[%c0_9, %c0_10] : memref<1x128xf32, #tpu.memory_space<vmem>>, vector<1x128xf32>
    %13 = vector.broadcast %12 : vector<1x128xf32> to vector<8x128xf32>
    %14 = arith.addf %11, %13 : vector<8x128xf32>
    %cst_11 = arith.constant dense<0xFF800000> : vector<8xf32>
    %15 = vector.multi_reduction <maximumf>, %14, %cst_11 [1] : vector<8x128xf32> to vector<8xf32>
    %16 = vector.shape_cast %15 : vector<8xf32> to vector<8x1xf32>
    %17 = vector.broadcast %16 : vector<8x1xf32> to vector<8x128xf32>
    %18 = arith.subf %14, %17 : vector<8x128xf32>
    %19 = math.exp %18 : vector<8x128xf32>
    %cst_12 = arith.constant dense<0.000000e+00> : vector<8xf32>
    %20 = vector.multi_reduction <add>, %19, %cst_12 [1] : vector<8x128xf32> to vector<8xf32>
    %21 = vector.shape_cast %20 : vector<8xf32> to vector<8x1xf32>
    %22 = math.log %21 : vector<8x1xf32>
    %23 = vector.broadcast %22 : vector<8x1xf32> to vector<8x128xf32>
    %24 = arith.subf %18, %23 : vector<8x128xf32>
    %25 = vector.extract_strided_slice %24 {offsets = [0, 0], sizes = [8, 10], strides = [1, 1]} : vector<8x128xf32> to vector<8x10xf32>
    %c0_13 = arith.constant 0 : index
    %c0_14 = arith.constant 0 : index
    %26 = vector.load %arg6[%c0_13, %c0_14] : memref<8x10xf32, #tpu.memory_space<vmem>>, vector<8x10xf32>
    tpu.vector_store %arg6[%c0_13, %c0_14], %25 {strides = array<i32>} : memref<8x10xf32, #tpu.memory_space<vmem>>, vector<8x10xf32>,
    return
  }
  func.func @transform_0(%arg0: i32) -> (i32, i32) {
    %c0_i32 = arith.constant 0 : i32
    %c0_i32_0 = arith.constant 0 : i32
    return %arg0, %c0_i32 : i32, i32
  }
  func.func @transform_1(%arg0: i32) -> (i32, i32) {
    %c0_i32 = arith.constant 0 : i32
    %c0_i32_0 = arith.constant 0 : i32
    %c0_i32_1 = arith.constant 0 : i32
    return %c0_i32, %c0_i32_0 : i32, i32
  }
  func.func @transform_2(%arg0: i32) -> (i32, i32) {
    %c0_i32 = arith.constant 0 : i32
    %c0_i32_0 = arith.constant 0 : i32
    %c0_i32_1 = arith.constant 0 : i32
    return %c0_i32, %c0_i32_0 : i32, i32
  }
  func.func @transform_3(%arg0: i32) -> (i32, i32) {
    %c0_i32 = arith.constant 0 : i32
    %c0_i32_0 = arith.constant 0 : i32
    %c0_i32_1 = arith.constant 0 : i32
    return %c0_i32, %c0_i32_0 : i32, i32
  }
  func.func @transform_4(%arg0: i32) -> (i32, i32) {
    %c0_i32 = arith.constant 0 : i32
    %c0_i32_0 = arith.constant 0 : i32
    %c0_i32_1 = arith.constant 0 : i32
    return %c0_i32, %c0_i32_0 : i32, i32
  }
  func.func @transform_5(%arg0: i32) -> (i32, i32) {
    %c0_i32 = arith.constant 0 : i32
    %c0_i32_0 = arith.constant 0 : i32
    return %arg0, %c0_i32 : i32, i32
  }
}

</mosaic_0001>

<bundles_post_ra>
// kernel: tpu_custom_call.1
= control target key start
LH: loop header
LB: loop body
LE: loop exit
PB: predicated region body
PF: predicated region fallthrough
CT: control target
= control target key end

     0   :  { %10 = vsyncpa [#allocation3], 0  ;;  %s438_s0 = inlined_call_operand.hbm [shape: f32[8,32], index: 0, kind: input, shape index: {}]   ;;  %s439_s1 = inlined_call_operand.hbm [shape: bf16[32,128], index: 1, kind: input, shape index: {}]   ;;  %s440_s2 = inlined_call_operand.vmem [shape: f32[1,128], index: 2, kind: input, shape index: {}]   ;;  %s441_s3 = inlined_call_operand.hbm [shape: bf16[128,128], index: 3, kind: input, shape index: {}]   ;;  %s442_s4 = inlined_call_operand.vmem [shape: f32[1,128], index: 4, kind: input, shape index: {}]   ;;  %s443_s5 = inlined_call_operand.hbm [shape: f32[8,10], index: 5, kind: output, shape index: {}]  }
   0x1   :  { %11 = vsyncpa [#allocation6], 0  ;;  %s28_s20 = sshll.u32 %s439_s1, 4  ;;  %s29_s20 = int_to_ptr.hbm [resolvable:$true] %s28_s20 }
   0x2   :  { %12 = vsyncpa [#allocation4], 0  ;;  %s384_s21 = smov [#allocation5]   ;;  %s18_s25 = sshll.u32 %s438_s0, 4  ;;  %s19_s25 = int_to_ptr.hbm [resolvable:$true] %s18_s25 }
   0x3   :  { %s30_s22 = sshll.u32 %s384_s21, 4  ;;  %s385_s26 = smov 64   ;;  %s31_s22 = int_to_ptr.vmem [resolvable:$true] %s30_s22 }
   0x4   :  { %s386_s27 = smov 4   ;;  %s387_s28 = smov [#allocation2]  }
   0x5   :  { %36 = dma.hbm_to_vmem [thread:$0]  %s29_s20, 256, %s31_s22, [#allocation6], %s385_s26, %s385_s26, %s386_s27  }
   0x6   :  { %s20_s29 = sshll.u32 %s387_s28, 4  ;;  %s43_s7 = sshll.u32 %s441_s3, 4  ;;  %s21_s29 = int_to_ptr.vmem [resolvable:$true] %s20_s29  ;;  %s44_s7 = int_to_ptr.hbm [resolvable:$true] %s43_s7 }
   0x7   :  { %23 = dma.hbm_to_vmem [thread:$0]  %s19_s25, 128, %s21_s29, [#allocation3]  }
   0x8   :  { %s388_s1 = smov [#allocation7]  }
   0x9   :  { %s45_s8 = sshll.u32 %s388_s1, 4  ;;  %s46_s8 = int_to_ptr.vmem [resolvable:$true] %s45_s8 }
   0xa   :  { %51 = dma.hbm_to_vmem [thread:$0]  %s44_s7, 1024, %s46_s8, [#allocation6], %s385_s26, %s385_s26, %s386_s27  }
   0xb   :  { %378 = dma.done.wait [#allocation3], 128  }
   0xc   :  { %379 = vsyncadd [#allocation3], 4294967168 }
   0xd   :  { %380 = dma.done.wait [#allocation6], 1280  }
   0xe   :  { %381 = vsyncadd [#allocation6], 4294966016  ;;  %v261_v0 = vld [vmem:[#allocation5 + $0x8] sm:$0xff]  ;;  %v260_v2 = vld [vmem:[#allocation5] sm:$0xff]  ;;  %vm89_vm0 = vcmask 261120   ;;  %s208_s14 = sshll.u32 %s443_s5, 4  ;;  %s209_s14 = int_to_ptr.hbm [resolvable:$true] %s208_s14 }
   0xf   :  { %v269_v1 = vld [vmem:[#allocation7 + $0x38] sm:$0xff]  ;;  %99 = vmatpush.bf16.msra.mxu0 %v261_v0  ;;  %v67_v3 = vld [vmem:[#allocation2] sm:$0xff]  ;;  %v268_v4 = vld [vmem:[#allocation7 + $0x30] sm:$0xff]  ;;  %vm199_vm1 = vcmask 80896  }
  0x10   :  { %176 = vmatpush.bf16.msra.mxu1 %v269_v1  ;;  %v68_v5 = vpack.c.bf16 %v67_v3, %v67_v3  ;;  %v267_v6 = vld [vmem:[#allocation7 + $0x28] sm:$0xff]  ;;  %v266_v7 = vld [vmem:[#allocation7 + $0x20] sm:$0xff]  ;;  %v265_v8 = vld [vmem:[#allocation7 + $0x18] sm:$0xff] }
  0x11   :  { %v264_v9 = vld [vmem:[#allocation7 + $0x10] sm:$0xff]  ;;  %v263_v10 = vld [vmem:[#allocation7 + $0x8] sm:$0xff]  ;;  %v262_v11 = vld [vmem:[#allocation7] sm:$0xff] }
  0x12   :  { %v276_v12 = vld [vmem:[%s440_s2] ss:$0 sm:$0xff]  ;;  %s389_s2 = smov [#allocation8]  }
  0x13   :  { %100 = vmatpush.bf16.msra.mxu0 %v260_v2  ;;  %v277_v18 = vld [vmem:[%s442_s4] ss:$0 sm:$0xff]  ;;  %s206_s11 = sshll.u32 %s389_s2, 4  ;;  %s207_s11 = int_to_ptr.vmem [resolvable:$true] %s206_s11 }
  0x14   :  { %177 = vmatpush.bf16.msra.mxu1 %v268_v4 }
  0x16   :  { %227 = vmatmul.msk.bf16.vlgmr.msra.gmra.mxu0 %vm89_vm0, %v68_v5 }
  0x18   :  { %178 = vmatpush.bf16.msra.mxu1 %v267_v6 }
  0x1c   :  { %179 = vmatpush.bf16.msra.mxu1 %v266_v7 }
  0x20   :  { %180 = vmatpush.bf16.msra.mxu1 %v265_v8 }
  0x24   :  { %181 = vmatpush.bf16.msra.mxu1 %v264_v9 }
  0x28   :  { %182 = vmatpush.bf16.msra.mxu1 %v263_v10 }
  0x2c   :  { %183 = vmatpush.bf16.msra.mxu1 %v262_v11 }
  0x93   :  { %v102_v13 = vpop.f32.mrf.mxu0 }
  0x94   :  { %v103_v14 = vadd.f32 %v276_v12, %v102_v13 }
  0x96   :  { %v106_v15 = vmax.f32 %v103_v14, 0.0 }
  0x98   :  { %v107_v16 = vpack.c.bf16 %v106_v15, %v106_v15 }
  0x9a   :  { %184 = vmatmul.bf16.vlgmr.msra.gmra.mxu1 %v107_v16 }
  0x9b   :  { %v104_v17 = vpop.f32.mrf.mxu0 }
 0x117   :  { %v185_v19 = vpop.f32.mrf.mxu1 }
 0x118   :  { %v186_v20 = vadd.f32 %v277_v18, %v185_v19 }
 0x11a   :  { %189 = vmax.xlane.f32.xlu0 %v186_v20 }
 0x11f   :  { %v187_v21 = vpop.f32.mrf.mxu1 }
 0x18d   :  { %v190_v22 = vpop.xlane.xlu0 %189 }
 0x18e   :  { %v191_v23 = vsub.f32 %v186_v20, %v190_v22 }
 0x190   :  { %v192_v24 = vmul.f32 1.442695, %v191_v23 }
 0x192   :  { %278 = vpow2.f32 %v192_v24 }
 0x198   :  { %v279_v25 = vpop.eup %278 }
 0x199   :  { %194 = vadd.xlane.f32.xlu0 %v279_v25 }
 0x20c   :  { %v195_v26 = vpop.xlane.xlu0 %194 }
 0x20d   :  { %280 = vlog2.f32 %v195_v26 }
 0x213   :  { %v281_v27 = vpop.eup %280 }
 0x214   :  { %v197_v28 = vmul.f32 0.6931472, %v281_v27 }
 0x216   :  { %v198_v29 = vsub.f32 %v191_v23, %v197_v28 }
 0x218   :  { %200 = vst.msk [vmem:[#allocation8] sm:$0xff] %vm199_vm1, %v198_v29 }
 0x219   :  { %211 = dma.vmem_to_hbm [thread:$0]  %s207_s11, 128, %s209_s14, [#allocation4]  }
 0x21a   :  { %382 = dma.done.wait [#allocation4], 128  }
 0x21b   :  { %383 = vsyncadd [#allocation4], 4294967168 }
 0x21c   :  { %216 = vsyncpa [#allocation3], 1 }
 0x21d   :  { %217 = vsyncpa [#allocation6], 1 }
 0x21e   :  { %218 = vsyncpa [#allocation4], 1 }

</bundles_post_ra>
